<compile_context>
chip_gen: v6e
topology: v6e:2x2x1
jax: 0.10.0
libtpu: 0.0.40
codegen_flags: <defaults>
</compile_context>

<pallas_src>
import numpy as np
import jax
import jax.numpy as jnp
from jax.experimental import pallas as pl
from jax.experimental.pallas import tpu as pltpu


def _setup_size(size):
    if isinstance(size, int):
        return (int(size), int(size))
    if len(size) == 1:
        return (int(size[0]), int(size[0]))
    return (int(size[0]), int(size[1]))


def _pil_bilinear_matrix(dst, src):
    """(dst, src) PIL-style BILINEAR weight matrix (triangle filter, antialiased on downscale)."""
    scale = src / dst
    filterscale = max(scale, 1.0)
    support = 1.0 * filterscale          # triangle filter support == 1
    inv = 1.0 / filterscale
    m = np.zeros((dst, src), np.float64)
    for i in range(dst):
        center = (i + 0.5) * scale
        xmin = max(int(center - support + 0.5), 0)
        xmax = min(int(center + support + 0.5), src)
        xs = np.arange(xmin, xmax)
        w = np.clip(1.0 - np.abs((xs - center + 0.5) * inv), 0.0, None)
        s = w.sum()
        if s > 0.0:
            w = w / s
        m[i, xmin:xmax] = w
    return m.astype(np.float32)


def _padded_matrices(H, Hk, W, new_h, new_w, eh, ew, pad_top, pad_left):
    """Interpolation matrices with the centered zero padding (and optional H zero-pad) folded in.

    a_h : (eh, Hk)  -- zero rows outside [pad_top, pad_top+new_h), zero cols for Hk > H.
    a_wt: (W, ew)   -- zero cols outside [pad_left, pad_left+new_w).
    """
    a_h = np.zeros((eh, Hk), np.float32)
    a_h[pad_top:pad_top + new_h, :H] = _pil_bilinear_matrix(new_h, H)
    a_wt = np.zeros((W, ew), np.float32)
    a_wt[:, pad_left:pad_left + new_w] = _pil_bilinear_matrix(new_w, W).T
    return a_h, a_wt


def _vmem_plan():
    """(vmem_limit_bytes, working-set budget) derived from this generation's physical VMEM."""
    phys = 64 << 20                      # conservative default (v7x per-TensorCore VMEM)
    try:
        get_info = getattr(pltpu, "get_tpu_info", None)
        if get_info is not None:
            phys = int(getattr(get_info(), "vmem_capacity_bytes", phys))
    except Exception:
        pass
    # 48 MiB limit on v7x (64 MiB physical), 100 MiB on v5e/v6e (128 MiB physical).
    limit = max(32 << 20, min(phys - (16 << 20), 100 << 20))
    # Working-set target for picking B; leave headroom for compiler scratch / spills.
    budget = min(limit * 3 // 4, 48 << 20)
    return int(limit), int(budget)


def resize_with_padding(img, expected_size, use_bf16=None):
    """img: (N, C, H, W) array. Returns (N, C, expected_h, expected_w), same dtype as img."""
    expected_size = _setup_size(expected_size)    # [0]=width, [1]=height (PIL img.size order)
    N, C, H, W = img.shape
    width, height = W, H                          # PIL img.size == (width, height)

    if width == 0 or height == 0:                 # spec: degenerate image returned as-is
        return img

    # Aspect-preserving new size (exactly the PyTorch/PIL module's arithmetic).
    if width > height:
        new_w = expected_size[0]
        new_h = int(expected_size[1] * height / width)
    else:
        new_w = int(expected_size[0] * width / height)
        new_h = expected_size[1]

    ew, eh = expected_size[0], expected_size[1]
    if new_w <= 0 or new_h <= 0:                  # resized image has no extent -> all padding
        return jnp.zeros((N, C, eh, ew), img.dtype)

    pad_left = (ew - new_w) // 2
    pad_top = (eh - new_h) // 2

    out_dtype = jnp.dtype(img.dtype)
    is_int_out = jnp.issubdtype(out_dtype, jnp.integer)
    if use_bf16 is None:
        use_bf16 = bool(is_int_out)               # exact for uint8 pixels; floats stay f32
    cdt = jnp.bfloat16 if use_bf16 else jnp.float32

    # Contraction order with fewer MXU flops (review item 3).
    w_first = H * ew * (W + eh) <= eh * W * (H + ew)

    NC = N * C
    x = img.reshape(NC, H, W)                     # native dtype; cast happens inside the kernel

    # The W-first path reshapes (B, Hk, W) -> (B*Hk, W); that leading-dim merge is layout-free
    # only when H is 8-aligned, so pad H once here (zero cols in A_h keep results identical).
    if w_first and H % 8 != 0:
        Hk = ((H + 7) // 8) * 8
        x = jnp.pad(x, ((0, 0), (0, Hk - H), (0, 0)))
    else:
        Hk = H

    a_h_np, a_wt_np = _padded_matrices(H, Hk, W, new_h, new_w, eh, ew, pad_top, pad_left)
    a_h = jnp.asarray(a_h_np, dtype=cdt)
    a_wt = jnp.asarray(a_wt_np, dtype=cdt)

    in_item = out_dtype.itemsize
    cdt_item = jnp.dtype(cdt).itemsize

    # ---- planes per grid step: budget against this generation's VMEM (review items 4-7) ------
    vmem_limit, budget = _vmem_plan()
    per_plane = (2 * Hk * W * in_item             # double-buffered input block
                 + 2 * eh * ew * in_item          # double-buffered output block
                 + Hk * W * cdt_item)             # compute-dtype copy of the input block
    if w_first:
        per_plane += Hk * ew * (4 + cdt_item)     # f32 + cdt copies of the (Hk, ew) intermediate
    fixed = 2 * (eh * Hk + W * ew) * cdt_item     # both weight blocks, double-buffered
    if not w_first:
        fixed += eh * W * (4 + cdt_item) + eh * ew * 4   # per-plane intermediates (not B-scaled)
    b_budget = max(1, (budget - fixed) // max(per_plane, 1)) if budget > fixed else 1
    # >= 4 grid steps when possible so each v7x TensorCore gets >= 2 pipelined steps; the 64 cap
    # only bounds the unrolled per-plane loop / compile time (VMEM binds first for real images).
    B = int(max(1, min(b_budget, max(1, NC // 4), 64, NC)))
    grid = (pl.cdiv(NC, B),)                      # ragged last block: OOB planes masked on store

    def kernel(a_h_ref, a_wt_ref, x_ref, o_ref):
        a_h_v = a_h_ref[...]                      # (eh, Hk) resident weights
        a_wt_v = a_wt_ref[...]                    # (W, ew)  resident weights

        def finalize(r):                          # r: (eh, ew) float32
            if is_int_out:
                ii = jnp.iinfo(out_dtype)
                r = jnp.clip(jnp.floor(r + 0.5), ii.min, ii.max)   # PIL-style half-up rounding
                return r.astype(jnp.int32).astype(out_dtype)
            return r.astype(out_dtype)

        if w_first:
            xin = x_ref[...]
            if xin.dtype != cdt:
                xin = xin.astype(jnp.float32).astype(cdt)
            # W-contraction as ONE tall MXU matmul: (B*Hk, W) @ (W, ew).
            t = jnp.dot(xin.reshape(B * Hk, W), a_wt_v, preferred_element_type=jnp.float32)
            t = t.reshape(B, Hk, ew).astype(cdt)
            # H-contraction: per-plane 2-D dots against the resident (eh, Hk) weight -- no
            # broadcast_to of A_h (no B*eh*Hk VMEM copy) and no lane<->sublane relayout of t.
            for b in range(B):
                o_ref[b] = finalize(jnp.dot(a_h_v, t[b], preferred_element_type=jnp.float32))
        else:
            # H-first: contract the more-shrinking axis first; both dots are 2-D per-plane
            # matmuls (the big one has N = W, keeping the MXU well filled).
            for b in range(B):
                xb = x_ref[b]
                if xb.dtype != cdt:
                    xb = xb.astype(jnp.float32).astype(cdt)
                u = jnp.dot(a_h_v, xb, preferred_element_type=jnp.float32)          # (eh, W)
                r = jnp.dot(u.astype(cdt), a_wt_v, preferred_element_type=jnp.float32)
                o_ref[b] = finalize(r)

    flops_per_plane = H * ew * (W + eh) if w_first else eh * W * (H + ew)
    cost = pl.CostEstimate(
        flops=2 * NC * flops_per_plane,
        transcendentals=0,
        bytes_accessed=NC * H * W * in_item + NC * eh * ew * in_item
                       + (eh * Hk + W * ew) * cdt_item,
    )

    out = pl.pallas_call(
        kernel,
        out_shape=jax.ShapeDtypeStruct((NC, eh, ew), out_dtype),
        grid=grid,
        in_specs=[
            pl.BlockSpec((eh, Hk), lambda i: (0, 0)),        # A_h (padding folded in), resident
            pl.BlockSpec((W, ew), lambda i: (0, 0)),         # A_w^T (padding folded in), resident
            pl.BlockSpec((B, Hk, W), lambda i: (i, 0, 0)),   # B planes per step, native dtype
        ],
        out_specs=pl.BlockSpec((B, eh, ew), lambda i: (i, 0, 0)),
        compiler_params=pltpu.CompilerParams(
            dimension_semantics=("parallel",),
            vmem_limit_bytes=vmem_limit,
        ),
        cost_estimate=cost,
    )(a_h, a_wt, x)

    return out.reshape(N, C, eh, ew)


def _reference(img, expected_size):
    """Pure-JAX reference: unpadded PIL-BILINEAR matrices + explicit centered zero pad."""
    expected_size = _setup_size(expected_size)
    _, _, H, W = img.shape
    if W > H:
        new_w = expected_size[0]
        new_h = int(expected_size[1] * H / W)
    else:
        new_w = int(expected_size[0] * W / H)
        new_h = expected_size[1]
    ew, eh = expected_size
    a_h = jnp.asarray(_pil_bilinear_matrix(new_h, H))
    a_w = jnp.asarray(_pil_bilinear_matrix(new_w, W))
    r = jnp.einsum("ah,nchw,bw->ncab", a_h, img.astype(jnp.float32), a_w, precision="highest")
    pad_l = (ew - new_w) // 2
    pad_t = (eh - new_h) // 2
    return jnp.pad(r, ((0, 0), (0, 0),
                       (pad_t, eh - new_h - pad_t),
                       (pad_l, ew - new_w - pad_l)))


if __name__ == "__main__":
    key = jax.random.PRNGKey(0)
    k1, k2, k3 = jax.random.split(key, 3)

    # Case 1: portrait f32 (H > W) -> H-first contraction order (per-plane resident-weight dots).
    x1 = jax.random.uniform(k1, (2, 4, 24, 16), dtype=jnp.float32)
    out1 = jax.block_until_ready(resize_with_padding(x1, 16))
    assert out1.shape == (2, 4, 16, 16), out1.shape
    np.testing.assert_allclose(np.asarray(out1), np.asarray(_reference(x1, 16)),
                               rtol=1e-5, atol=1e-5)

    # Case 2: landscape f32 (W > H) -> W-first order (one tall fused (B*H, W) @ (W, ew) matmul).
    x2 = jax.random.uniform(k2, (2, 4, 16, 24), dtype=jnp.float32)
    out2 = jax.block_until_ready(resize_with_padding(x2, 16))
    assert out2.shape == (2, 4, 16, 16), out2.shape
    np.testing.assert_allclose(np.asarray(out2), np.asarray(_reference(x2, 16)),
                               rtol=1e-5, atol=1e-5)

    # Case 3: uint8 image -> bf16 MXU path + PIL-style half-up rounding.
    x3 = jax.random.randint(k3, (1, 3, 64, 128), 0, 256, dtype=jnp.int32).astype(jnp.uint8)
    out3 = jax.block_until_ready(resize_with_padding(x3, 32))
    assert out3.shape == (1, 3, 32, 32) and out3.dtype == jnp.uint8, (out3.shape, out3.dtype)
    ref3 = np.clip(np.floor(np.asarray(_reference(x3, 32)) + 0.5), 0, 255)
    np.testing.assert_allclose(np.asarray(out3).astype(np.float32), ref3.astype(np.float32),
                               atol=3)

    print("KERNEL_OK")
</pallas_src>

<mosaic_0001>
module attributes {stable_mosaic.version = 11 : i64} {
  func.func @kernel(%arg0: i32, %arg1: memref<16x24xf32, #tpu.memory_space<vmem>>, %arg2: memref<16x16xf32, #tpu.memory_space<vmem>>, %arg3: memref<2x24x16xf32, #tpu.memory_space<vmem>>, %arg4: memref<2x16x16xf32, #tpu.memory_space<vmem>>) attributes {dimension_semantics = [#tpu.dimension_semantics<parallel>], iteration_bounds = array<i64: 4>, scalar_prefetch = 0 : i64, scratch_operands = 0 : i64, tpu.core_type = #tpu.core_type<tc>, window_params = [{pipeline_mode = #tpu.pipeline_mode<synchronous>, transform_indices = @transform_0, window_bounds = array<i64: 16, 24>}, {pipeline_mode = #tpu.pipeline_mode<synchronous>, transform_indices = @transform_1, window_bounds = array<i64: 16, 16>}, {transform_indices = @transform_2, window_bounds = array<i64: 2, 24, 16>}, {transform_indices = @transform_3, window_bounds = array<i64: 2, 16, 16>}]} {
    %c0 = arith.constant 0 : index
    %c0_0 = arith.constant 0 : index
    %0 = vector.load %arg1[%c0, %c0_0] : memref<16x24xf32, #tpu.memory_space<vmem>>, vector<16x24xf32>
    %c0_1 = arith.constant 0 : index
    %c0_2 = arith.constant 0 : index
    %1 = vector.load %arg2[%c0_1, %c0_2] : memref<16x16xf32, #tpu.memory_space<vmem>>, vector<16x16xf32>
    %c0_3 = arith.constant 0 : index
    %c0_4 = arith.constant 0 : index
    %c0_5 = arith.constant 0 : index
    %2 = vector.load %arg3[%c0_3, %c0_4, %c0_5] : memref<2x24x16xf32, #tpu.memory_space<vmem>>, vector<1x24x16xf32>
    %3 = vector.shape_cast %2 : vector<1x24x16xf32> to vector<24x16xf32>
    %cst = arith.constant dense<0.000000e+00> : vector<16x16xf32>
    %4 = tpu.matmul %0, %3, %cst {dimension_numbers = #tpu.dot_dimension_numbers<[1], [0], [0], [1], [0, 0, 1, 1], [], []>} : vector<16x24xf32>, vector<24x16xf32>, vector<16x16xf32> -> vector<16x16xf32>
    %cst_6 = arith.constant dense<0.000000e+00> : vector<16x16xf32>
    %5 = tpu.matmul %4, %1, %cst_6 {dimension_numbers = #tpu.dot_dimension_numbers<[1], [0], [0], [1], [0, 0, 1, 1], [], []>} : vector<16x16xf32>, vector<16x16xf32>, vector<16x16xf32> -> vector<16x16xf32>
    %c0_7 = arith.constant 0 : index
    %c0_8 = arith.constant 0 : index
    %c0_9 = arith.constant 0 : index
    %6 = vector.load %arg4[%c0_7, %c0_8, %c0_9] : memref<2x16x16xf32, #tpu.memory_space<vmem>>, vector<1x16x16xf32>
    %7 = vector.shape_cast %6 : vector<1x16x16xf32> to vector<16x16xf32>
    %8 = vector.shape_cast %5 : vector<16x16xf32> to vector<1x16x16xf32>
    tpu.vector_store %arg4[%c0_7, %c0_8, %c0_9], %8 {strides = array<i32>} : memref<2x16x16xf32, #tpu.memory_space<vmem>>, vector<1x16x16xf32>,
    %c1 = arith.constant 1 : index
    %c0_10 = arith.constant 0 : index
    %c0_11 = arith.constant 0 : index
    %9 = vector.load %arg3[%c1, %c0_10, %c0_11] : memref<2x24x16xf32, #tpu.memory_space<vmem>>, vector<1x24x16xf32>
    %10 = vector.shape_cast %9 : vector<1x24x16xf32> to vector<24x16xf32>
    %cst_12 = arith.constant dense<0.000000e+00> : vector<16x16xf32>
    %11 = tpu.matmul %0, %10, %cst_12 {dimension_numbers = #tpu.dot_dimension_numbers<[1], [0], [0], [1], [0, 0, 1, 1], [], []>} : vector<16x24xf32>, vector<24x16xf32>, vector<16x16xf32> -> vector<16x16xf32>
    %cst_13 = arith.constant dense<0.000000e+00> : vector<16x16xf32>
    %12 = tpu.matmul %11, %1, %cst_13 {dimension_numbers = #tpu.dot_dimension_numbers<[1], [0], [0], [1], [0, 0, 1, 1], [], []>} : vector<16x16xf32>, vector<16x16xf32>, vector<16x16xf32> -> vector<16x16xf32>
    %c1_14 = arith.constant 1 : index
    %c0_15 = arith.constant 0 : index
    %c0_16 = arith.constant 0 : index
    %13 = vector.load %arg4[%c1_14, %c0_15, %c0_16] : memref<2x16x16xf32, #tpu.memory_space<vmem>>, vector<1x16x16xf32>
    %14 = vector.shape_cast %13 : vector<1x16x16xf32> to vector<16x16xf32>
    %15 = vector.shape_cast %12 : vector<16x16xf32> to vector<1x16x16xf32>
    tpu.vector_store %arg4[%c1_14, %c0_15, %c0_16], %15 {strides = array<i32>} : memref<2x16x16xf32, #tpu.memory_space<vmem>>, vector<1x16x16xf32>,
    return
  }
  func.func @transform_0(%arg0: i32) -> (i32, i32) {
    %c0_i32 = arith.constant 0 : i32
    %c0_i32_0 = arith.constant 0 : i32
    %c0_i32_1 = arith.constant 0 : i32
    return %c0_i32, %c0_i32_0 : i32, i32
  }
  func.func @transform_1(%arg0: i32) -> (i32, i32) {
    %c0_i32 = arith.constant 0 : i32
    %c0_i32_0 = arith.constant 0 : i32
    %c0_i32_1 = arith.constant 0 : i32
    return %c0_i32, %c0_i32_0 : i32, i32
  }
  func.func @transform_2(%arg0: i32) -> (i32, i32, i32) {
    %c0_i32 = arith.constant 0 : i32
    %c0_i32_0 = arith.constant 0 : i32
    %c0_i32_1 = arith.constant 0 : i32
    return %arg0, %c0_i32, %c0_i32_0 : i32, i32, i32
  }
  func.func @transform_3(%arg0: i32) -> (i32, i32, i32) {
    %c0_i32 = arith.constant 0 : i32
    %c0_i32_0 = arith.constant 0 : i32
    %c0_i32_1 = arith.constant 0 : i32
    return %arg0, %c0_i32, %c0_i32_0 : i32, i32, i32
  }
}

</mosaic_0001>

<bundles_post_ra>
// kernel: tpu_custom_call.1
= control target key start
LH: loop header
LB: loop body
LE: loop exit
PB: predicated region body
PF: predicated region fallthrough
CT: control target
= control target key end

     0   :  { %8 = vsyncpa [#allocation3], 0  ;;  %s918_s0 = inlined_call_operand.vmem [shape: f32[16,24], index: 0, kind: input, shape index: {}]   ;;  %s919_s1 = inlined_call_operand.vmem [shape: f32[16,16], index: 1, kind: input, shape index: {}]   ;;  %s920_s2 = inlined_call_operand.vmem [shape: f32[8,24,16], index: 2, kind: input, shape index: {}]   ;;  %s921_s3 = inlined_call_operand.hbm [shape: f32[8,16,16], index: 3, kind: output, shape index: {}]  }
   0x1   :  { %10 = vsyncpa [#allocation3 + $0x1], 0  ;;  %s793_s12 = smov 0   ;;  %s795_s13 = smov 0  }
   0x2   :  { %s797_s14 = smov 0   ;;  %s799_s15 = smov 0  }
   0x3 LB: > { %s814_s16 = sadd.s32 4294967295, %s768_s15   ;;  %s588_s17 = sadd.s32 4294967294, %s768_s15   ;;  %s768_s15 = sphi %s799_s15, %s927_s15   ;;  %s764_s14 = sphi %s797_s14, %s926_s14   ;;  %s760_s13 = sphi %s795_s13, %s925_s13   ;;  %s756_s12 = sphi %s793_s12, %s924_s12  }
   0x4   : > { %s818_s18 = sadd.s32 1, %s768_s15   ;;  %s91_s19 = sadd.s32 1, %s764_s14 }
   0x5   : > { %s88_s20 = ssub.s32 %s768_s15, %s818_s18  ;;  %p101_p0 = scmp.ne.s32.totalorder %s764_s14, %s760_s13 }
   0x6   : > { %p89_p1 = scmp.eq.s32.totalorder %s88_s20, 0  ;;  %p102_p2 = scmp.eq.s32.totalorder %s814_s16, 3 }
   0x7   : > { %p107_p3 = scmp.ne.s32.totalorder %s760_s13, %s756_s12  ;;  %p108_p4 = scmp.eq.s32.totalorder %s588_s17, 3 }
   0x8   : > { %s829_s21 = scalar_select %p89_p1, %s764_s14, %s91_s19  }
   0x9   : > { %p831_p5 = por %p102_p2, %p101_p0  ;;  %p835_p6 = por %p108_p4, %p107_p3 }
   0xa   : > { %p591_p7 = scmp.ge.s32.totalorder %s768_s15, 1  ;;  %p142_p8 = scmp.lt.s32.totalorder %s768_s15, 5 }
   0xc   : > { %p143_p9 = pnand %p591_p7, %p142_p8 }
   0xd   : > { %s593_s24 = sshll.u32 (!%p143_p9), %s814_s16, 1  ;;  %s164_s10 = sand.u32 (!%p143_p9), 1, %s760_s13  }
   0xe   : > { %146 = sbr.rel (%p143_p9) target bundleno = 637 (0x27d), region = 32  ;;  %p168_p10 = scmp.lt.s32.totalorder (!%p143_p9), %s593_s24, 7 }
   0xf   : > { %s592_s11 = sshll.u32 (!%p143_p9), %s164_s10, 5  ;;  %s615_s20 = sshll.u32 (!%p143_p9), %s814_s16, 9 }
  0x10   : > { %s166_s17 = scalar_lea.vmem (!%p143_p9), [#allocation2], %s592_s11  ;;  %s874_s26 = scalar_lea.hbm (!%p143_p9), %s921_s3, %s615_s20 }
  0x11   : > { %s526_s19 = sshll.u32 (!%p143_p9), %s166_s17, 4  ;;  %s878_s27 = scalar_lea.sflag (!%p143_p9), [#allocation3], %s164_s10  ;;  %s869_s19 = int_to_ptr.vmem [resolvable:$true] %s526_s19 }
  0x12   : > { %s708_s28 = scalar_lea.vmem (!%p143_p9), %s869_s19, 512  ;;  %s770_s16 = smov (!%p143_p9), [#allocation2]  }
  0x13   : > { %v175_v0 = vld [vmem:[%s918_s0] sm:$0xff]  ;;  %vm182_vm0 = vcmask 195584   ;;  %v178_v1 = vld [vmem:[%s919_s1 + $0x8] sm:$0xff]  ;;  %s929_s24 = smov (!%p168_p10, %s593_s24), 7  ;;  %vm264_vm1 = vcmask 130048   ;;  %p709_p11 = scmp.ne.s32.totalorder %s869_s19, %s708_s28 }
  0x14   : > { %640 = vmatprep.mubr.msk.f32.mxu0 %vm182_vm0, %v175_v0  ;;  %643 = vmatprep.subr.mxu1 %v178_v1  ;;  %s666_s29 = smul.u32 24, %s929_s24  ;;  %v176_v5 = vld [vmem:[%s918_s0 + $0x8] sm:$0xff]  ;;  %v177_v6 = vld [vmem:[%s919_s1] sm:$0xff] }
  0x15   : > { %644 = vmatpush3.msra.mxu1 %v178_v1  ;;  %p710_p12 = pnand %p709_p11, %p831_p5 }
  0x16   : > { %s172_s5 = scalar_lea.vmem %s920_s2, %s666_s29  ;;  %645 = vmatprep.subr.mxu1 %v177_v6  ;;  %s712_s29 = sshll.u32 %s770_s16, 4  ;;  %s713_s29 = int_to_ptr.vmem [resolvable:$false] %s712_s29 }
  0x17   : > { %v181_v2 = vld [vmem:[%s172_s5 + $0x10] sm:$0xff]  ;;  %v180_v3 = vld [vmem:[%s172_s5 + $0x8] sm:$0xff]  ;;  %v179_v4 = vld [vmem:[%s172_s5] sm:$0xff]  ;;  %646 = vmatpush3.msra.mxu1 %v177_v6  ;;  %p711_p13 = pneg %p710_p12  ;;  %s714_s30 = scalar_lea.vmem %s713_s29, 1024 }
  0x18   : > { %634 = vmatprep.subr.mxu0 %v181_v2  ;;  %v601_v7 = vld [vmem:[%s172_s5 + $0x28] sm:$0xff]  ;;  %v600_v10 = vld [vmem:[%s172_s5 + $0x20] sm:$0xff]  ;;  %v599_v11 = vld [vmem:[%s172_s5 + $0x18] sm:$0xff]  ;;  %p715_p0 = scmp.lt.s32.totalorder %s869_s19, %s713_s29  ;;  %p716_p1 = scmp.lt.s32.totalorder %s714_s30, %s708_s28 }
  0x19   : > { %635 = vmatpush3.msra.mxu0 %v181_v2  ;;  %650 = vmatprep.subr.mxu1 %v601_v7 }
  0x1a   : > { %636 = vmatprep.subr.mxu0 %v180_v3  ;;  %p717_p2 = por %p716_p1, %p715_p0 }
  0x1b   : > { %637 = vmatpush3.msra.mxu0 %v180_v3 }
  0x1c   : > { %638 = vmatprep.subr.mxu0 %v179_v4  ;;  %p718_p3 = pnand %p717_p2, %p711_p13 }
  0x1d   : > { %639 = vmatpush3.msra.mxu0 %v179_v4 }
  0x1e   : > { %641 = vmatmul.mubr.msk.f32.vlgmr.msra.gmra.mxu0 %vm182_vm0, %v176_v5  ;;  %659 = vmatprep.subr.mxu0 %v178_v1 }
  0x1f   : > { %660 = vmatpush3.msra.mxu0 %v178_v1 }
  0x20   : > { %661 = vmatprep.subr.mxu0 %v177_v6 }
  0x21   : > { %662 = vmatpush3.msra.mxu0 %v177_v6 }
  0xde   : > { %v642_v8 = vpop.f32.mrf.mxu0 }
  0xe0   : > { %v255_v9 = vpop.f32.mrf.mxu0 }
  0xe1   : > { %647 = vmatprep.mubr.msk.f32.mxu1 %vm264_vm1, %v255_v9 }
  0xe2   : > { %648 = vmatmul.mubr.msk.f32.vlgmr.msra.gmra.mxu1 %vm264_vm1, %v642_v8 }
  0xe3   : > { %651 = vmatpush3.msra.mxu1 %v601_v7  ;;  %656 = vmatprep.mubr.msk.f32.mxu1 %vm182_vm0, %v175_v0 }
  0xe4   : > { %652 = vmatprep.subr.mxu1 %v600_v10 }
  0xe5   : > { %653 = vmatpush3.msra.mxu1 %v600_v10 }
  0xe6   : > { %654 = vmatprep.subr.mxu1 %v599_v11 }
  0xe7   : > { %655 = vmatpush3.msra.mxu1 %v599_v11 }
  0xe8   : > { %657 = vmatmul.mubr.msk.f32.vlgmr.msra.gmra.mxu1 %vm182_vm0, %v176_v5 }
 0x1a2   : > { %v649_v12 = vpop.f32.mrf.mxu1 }
 0x1a3   : > { %347 = vst.msk [vmem:[%s166_s17 + $0x8] sm:$0xff] %vm264_vm1, %v649_v12 }
 0x1a4   : > { %v337_v13 = vpop.f32.mrf.mxu1 }
 0x1a5   : > { %346 = vst.msk [vmem:[%s166_s17] sm:$0xff] %vm264_vm1, %v337_v13 }
 0x1a8   : > { %v658_v14 = vpop.f32.mrf.mxu1 }
 0x1aa   : > { %v418_v15 = vpop.f32.mrf.mxu1 }
 0x1ab   : > { %663 = vmatprep.mubr.msk.f32.mxu0 %vm264_vm1, %v418_v15 }
 0x1ac   : > { %664 = vmatmul.mubr.msk.f32.vlgmr.msra.gmra.mxu0 %vm264_vm1, %v658_v14 }
 0x26c   : > { %v665_v16 = vpop.f32.mrf.mxu0 }
 0x26d   : > { %607 = vst.msk [vmem:[%s166_s17 + $0x18] sm:$0xff] %vm264_vm1, %v665_v16 }
 0x26e   : > { %v499_v17 = vpop.f32.mrf.mxu0 }
 0x26f   : > { %606 = vst.msk [vmem:[%s166_s17 + $0x10] sm:$0xff] %vm264_vm1, %v499_v17 }
 0x270   : > { %721 = shalt.err (!%p718_p3)
}
 0x271   : > { %s722_s4 = scalar_lea.hbm %s874_s26, 512  ;;  %s726_s7 = scalar_lea.hbm %s921_s3, 2048 }
 0x272   : > { %p723_p4 = scmp.ne.s32.totalorder %s874_s26, %s722_s4  ;;  %p727_p9 = scmp.lt.s32.totalorder %s874_s26, %s921_s3 }
 0x273   : > { %p728_p10 = scmp.lt.s32.totalorder %s726_s7, %s722_s4 }
 0x274   : > { %p724_p7 = pnand %p723_p4, %p831_p5 }
 0x275   : > { %p729_p11 = por %p728_p10, %p727_p9 }
 0x276   : > { %p725_p8 = pneg %p724_p7 }
 0x278   : > { %p730_p12 = pnand %p729_p11, %p725_p8 }
 0x27a   : > { %733 = shalt.err (!%p730_p12)
}
 0x27b   : > { %s771_s10 = smov 128   ;;  %s772_s11 = smov 8  }
 0x27c   : > { %667 = dma.vmem_to_hbm [thread:$0]  (%p831_p5), %s869_s19, 512, %s874_s26, %s878_s27, %s771_s10, %s771_s10, %s772_s11  }
 0x27d PF: > { %p673_p13 = scmp.ge.s32.totalorder %s768_s15, 2  ;;  %s541_s17 = sand.u32 1, %s756_s12  }
 0x27e   : > { %s542_s20 = scalar_lea.sflag [#allocation3], %s541_s17 }
 0x27f   : > { %p670_p0 = pnand %p673_p13, %p835_p6 }
 0x281   : > { %p671_p1 = pneg %p670_p0 }
 0x283   : > { %751 = dma.done.wait (%p671_p1), %s542_s20, 512  }
 0x284   : > { %753 = vsyncadd (%p671_p1), %s542_s20, 4294966784  ;;  %p13_p2 = scmp.ge.s32.totalorder %s818_s18, 6   ;;  %s924_s12 = smov %s760_s13 }
 0x285   : > { %s925_s13 = smov %s764_s14  ;;  %s926_s14 = smov %s829_s21 }
 0x286   : > { %s927_s15 = smov %s818_s18  ;;  %15 = sbr.rel (!%p13_p2) target bundleno = 3 (0x3), region = 69 }
 0x28b   :  { %547 = vsyncpa [#allocation3], 1 }
 0x28c   :  { %549 = vsyncpa [#allocation3 + $0x1], 1 }

</bundles_post_ra>
